<compile_context>
chip_gen: v5e
topology: v5e:2x2
jax: 0.10.0
libtpu: 0.0.40
codegen_flags: <defaults>
</compile_context>

<pallas_src>
import functools

import jax
import jax.numpy as jnp
from jax.experimental import pallas as pl
from jax.experimental.pallas import tpu as pltpu

_LANE = 128


def _round_up(n, m):
    return ((n + m - 1) // m) * m


def _fused_kernel(x_ref, inv_std_ref, mean_s_ref, w1_ref, b1_ref, w2_ref,
                  b2_ref, out_ref):
    # --- preprocess: x*inv_std - mean*inv_std, clamp to [-3, 3] ---
    # Elementwise math stays f32 (v5e has no bf16 VPU); only MXU operands
    # are bf16.
    xn = jnp.clip(x_ref[...] * inv_std_ref[...] - mean_s_ref[...], -3.0, 3.0)

    # --- layer 1: bf16 operands on the MXU, f32 accumulation ---
    h = jnp.dot(xn.astype(jnp.bfloat16), w1_ref[...],
                preferred_element_type=jnp.float32)
    h = jnp.maximum(h + b1_ref[...], 0.0)

    # --- layer 2: unpadded (TM, O) result tile ---
    o = jnp.dot(h.astype(jnp.bfloat16), w2_ref[...],
                preferred_element_type=jnp.float32)
    out_ref[...] = (o + b2_ref[...]).astype(out_ref.dtype)


def prepack_params(mean, std, w1, b1, w2, b2):
    """One-time (module-init) packing: reciprocal-of-std, lane-padded bf16
    weights.  Keeps this traffic out of the per-call path."""
    mean = jnp.asarray(mean, jnp.float32).reshape(1, -1)
    std = jnp.asarray(std, jnp.float32).reshape(1, -1)
    w1 = jnp.asarray(w1, jnp.float32)
    b1 = jnp.asarray(b1, jnp.float32).reshape(1, -1)
    w2 = jnp.asarray(w2, jnp.float32)
    b2 = jnp.asarray(b2, jnp.float32).reshape(1, -1)

    H = w1.shape[1]
    Hp = _round_up(H, _LANE)

    # Fold the divide into one multiply + subtract per element in-kernel.
    inv_std = 1.0 / std
    mean_s = mean * inv_std

    # Zero-pad the hidden dim to 128 lanes: padded hidden lanes are
    # relu(0 + 0) = 0 and padded W2 rows are zero, so they contribute nothing.
    w1p = jnp.pad(w1, ((0, 0), (0, Hp - H))).astype(jnp.bfloat16)
    b1p = jnp.pad(b1, ((0, 0), (0, Hp - H)))
    w2p = jnp.pad(w2, ((0, Hp - H), (0, 0))).astype(jnp.bfloat16)
    return inv_std, mean_s, w1p, b1p, w2p, b2


def _choose_tile(batch, block_rows):
    """Large batch tiles (step overhead dominates), but guarantee >= 2 grid
    steps when the batch allows so both v7x TensorCores get work."""
    if batch <= 8:
        return batch                       # single block == full dim (legal)
    tm = min(block_rows, batch)
    if tm >= batch and batch >= 16:
        # Whole batch would fit in one tile: split into two 8-aligned halves.
        tm = _round_up(pl.cdiv(batch, 2), 8)
    else:
        tm = min(_round_up(tm, 8), batch)  # keep sublane alignment when TM<B
    return tm


@functools.partial(jax.jit, static_argnames=("block_rows",))
def preprocess_and_forward(x, inv_std, mean_s, w1p, b1p, w2p, b2, *,
                           block_rows=1024):
    B, D = x.shape
    Hp = w1p.shape[1]
    O = w2p.shape[1]

    TM = _choose_tile(B, block_rows)
    grid = (pl.cdiv(B, TM),)
    # Note: when B % TM != 0 the last partial block computes on out-of-range
    # rows whose stores are dropped -- valid rows are unaffected.

    # Resident (grid-invariant) operands: constant index_map keeps them in
    # VMEM for the whole call.
    resident = lambda shape: pl.BlockSpec(shape, lambda i: (0, 0))

    # Explicit VMEM budget (double-buffered x/out tiles + resident weights),
    # generous headroom; fits every generation including v7x's 64 MiB.
    vmem_bytes = (2 * TM * (D + O) * 4            # x / out f32 tiles (x2 bufs)
                  + 2 * (D * Hp + Hp * O) * 2     # bf16 weights (x2 bufs)
                  + 2 * (2 * D + Hp + O) * 4)     # stats + biases
    vmem_limit = min(64 << 20, max(32 << 20, 4 * vmem_bytes))

    cost = pl.CostEstimate(
        flops=2 * B * (D * Hp + Hp * O),           # padded work actually done
        transcendentals=0,
        bytes_accessed=(B * D * 4                  # x (f32)
                        + (D * Hp + Hp * O) * 2    # bf16 weights
                        + (2 * D + Hp + O) * 4     # stats + biases
                        + B * O * 4),              # unpadded output
    )

    return pl.pallas_call(
        _fused_kernel,
        out_shape=jax.ShapeDtypeStruct((B, O), jnp.float32),
        grid=grid,
        in_specs=[
            pl.BlockSpec((TM, D), lambda i: (i, 0)),   # x: tiled over batch
            resident((1, D)),                          # 1/std
            resident((1, D)),                          # mean/std
            resident((D, Hp)),                         # W1 (bf16, lane-padded)
            resident((1, Hp)),                         # b1
            resident((Hp, O)),                         # W2 (bf16, padded rows)
            resident((1, O)),                          # b2
        ],
        # Unpadded output block: last dim O equals the full array dim (legal),
        # no padded writeback and no external slice pass.
        out_specs=pl.BlockSpec((TM, O), lambda i: (i, 0)),
        compiler_params=pltpu.CompilerParams(
            dimension_semantics=("parallel",),
            vmem_limit_bytes=vmem_limit),
        cost_estimate=cost,
    )(x, inv_std, mean_s, w1p, b1p, w2p, b2)


def _reference(x, mean, std, w1, b1, w2, b2):
    xn = jnp.clip((x - mean) / std, -3.0, 3.0)
    h = jnp.maximum(xn @ w1 + b1, 0.0)
    return h @ w2 + b2


if __name__ == "__main__":
    B, D, H, O = 512, 32, 64, 16

    key = jax.random.PRNGKey(0)
    kx, km, ks, kw1, kb1, kw2, kb2 = jax.random.split(key, 7)

    x = jax.random.normal(kx, (B, D), dtype=jnp.float32) * 2.0 + 0.5
    mean = jax.random.normal(km, (1, D), dtype=jnp.float32) * 0.1
    std = jax.random.uniform(ks, (1, D), dtype=jnp.float32,
                             minval=0.5, maxval=1.5)
    w1 = jax.random.normal(kw1, (D, H), dtype=jnp.float32) * 0.1
    b1 = jax.random.normal(kb1, (1, H), dtype=jnp.float32) * 0.01
    w2 = jax.random.normal(kw2, (H, O), dtype=jnp.float32) * 0.1
    b2 = jax.random.normal(kb2, (1, O), dtype=jnp.float32) * 0.01

    # Module-init analog: pack once, reuse across calls.
    packed = prepack_params(mean, std, w1, b1, w2, b2)

    # Default block_rows=1024 -> B=512 splits into two 256-row tiles, so the
    # batch pipeline (and v7x 2-TC split) is actually exercised.
    out = preprocess_and_forward(x, *packed)
    out = jax.block_until_ready(out)

    ref = _reference(x, mean, std, w1, b1, w2, b2)
    assert out.shape == (B, O)
    # bf16 MXU operands vs f32 reference -> relaxed tolerance.
    assert jnp.allclose(out, ref, atol=5e-2, rtol=5e-2), "mismatch vs reference"

    print("KERNEL_OK")
</pallas_src>

<mosaic_0001>
module attributes {stable_mosaic.version = 11 : i64} {
  func.func @_fused_kernel(%arg0: i32, %arg1: memref<256x32xf32, #tpu.memory_space<vmem>>, %arg2: memref<1x32xf32, #tpu.memory_space<vmem>>, %arg3: memref<1x32xf32, #tpu.memory_space<vmem>>, %arg4: memref<32x128xbf16, #tpu.memory_space<vmem>>, %arg5: memref<1x128xf32, #tpu.memory_space<vmem>>, %arg6: memref<128x16xbf16, #tpu.memory_space<vmem>>, %arg7: memref<1x16xf32, #tpu.memory_space<vmem>>, %arg8: memref<256x16xf32, #tpu.memory_space<vmem>>) attributes {dimension_semantics = [#tpu.dimension_semantics<parallel>], iteration_bounds = array<i64: 2>, scalar_prefetch = 0 : i64, scratch_operands = 0 : i64, tpu.core_type = #tpu.core_type<tc>, window_params = [{transform_indices = @transform_0, window_bounds = array<i64: 256, 32>}, {pipeline_mode = #tpu.pipeline_mode<synchronous>, transform_indices = @transform_1, window_bounds = array<i64: 1, 32>}, {pipeline_mode = #tpu.pipeline_mode<synchronous>, transform_indices = @transform_2, window_bounds = array<i64: 1, 32>}, {pipeline_mode = #tpu.pipeline_mode<synchronous>, transform_indices = @transform_3, window_bounds = array<i64: 32, 128>}, {pipeline_mode = #tpu.pipeline_mode<synchronous>, transform_indices = @transform_4, window_bounds = array<i64: 1, 128>}, {pipeline_mode = #tpu.pipeline_mode<synchronous>, transform_indices = @transform_5, window_bounds = array<i64: 128, 16>}, {pipeline_mode = #tpu.pipeline_mode<synchronous>, transform_indices = @transform_6, window_bounds = array<i64: 1, 16>}, {transform_indices = @transform_7, window_bounds = array<i64: 256, 16>}]} {
    %c0 = arith.constant 0 : index
    %c0_0 = arith.constant 0 : index
    %0 = vector.load %arg1[%c0, %c0_0] : memref<256x32xf32, #tpu.memory_space<vmem>>, vector<256x32xf32>
    %c0_1 = arith.constant 0 : index
    %c0_2 = arith.constant 0 : index
    %1 = vector.load %arg2[%c0_1, %c0_2] : memref<1x32xf32, #tpu.memory_space<vmem>>, vector<1x32xf32>
    %2 = vector.broadcast %1 : vector<1x32xf32> to vector<256x32xf32>
    %3 = arith.mulf %0, %2 : vector<256x32xf32>
    %c0_3 = arith.constant 0 : index
    %c0_4 = arith.constant 0 : index
    %4 = vector.load %arg3[%c0_3, %c0_4] : memref<1x32xf32, #tpu.memory_space<vmem>>, vector<1x32xf32>
    %5 = vector.broadcast %4 : vector<1x32xf32> to vector<256x32xf32>
    %6 = arith.subf %3, %5 : vector<256x32xf32>
    %cst = arith.constant -3.000000e+00 : f32
    %cst_5 = arith.constant 3.000000e+00 : f32
    %7 = vector.broadcast %cst : f32 to vector<256x32xf32>
    %8 = arith.maximumf %7, %6 : vector<256x32xf32>
    %9 = vector.broadcast %cst_5 : f32 to vector<256x32xf32>
    %10 = arith.minimumf %9, %8 : vector<256x32xf32>
    %11 = arith.truncf %10 : vector<256x32xf32> to vector<256x32xbf16>
    %c0_6 = arith.constant 0 : index
    %c0_7 = arith.constant 0 : index
    %12 = vector.load %arg4[%c0_6, %c0_7] : memref<32x128xbf16, #tpu.memory_space<vmem>>, vector<32x128xbf16>
    %cst_8 = arith.constant dense<0.000000e+00> : vector<256x128xf32>
    %13 = tpu.matmul %11, %12, %cst_8 {dimension_numbers = #tpu.dot_dimension_numbers<[1], [0], [0], [1], [0, 0, 1, 1], [], []>} : vector<256x32xbf16>, vector<32x128xbf16>, vector<256x128xf32> -> vector<256x128xf32>
    %c0_9 = arith.constant 0 : index
    %c0_10 = arith.constant 0 : index
    %14 = vector.load %arg5[%c0_9, %c0_10] : memref<1x128xf32, #tpu.memory_space<vmem>>, vector<1x128xf32>
    %15 = vector.broadcast %14 : vector<1x128xf32> to vector<256x128xf32>
    %16 = arith.addf %13, %15 : vector<256x128xf32>
    %cst_11 = arith.constant 0.000000e+00 : f32
    %17 = vector.broadcast %cst_11 : f32 to vector<256x128xf32>
    %18 = arith.maximumf %16, %17 : vector<256x128xf32>
    %19 = arith.truncf %18 : vector<256x128xf32> to vector<256x128xbf16>
    %c0_12 = arith.constant 0 : index
    %c0_13 = arith.constant 0 : index
    %20 = vector.load %arg6[%c0_12, %c0_13] : memref<128x16xbf16, #tpu.memory_space<vmem>>, vector<128x16xbf16>
    %cst_14 = arith.constant dense<0.000000e+00> : vector<256x16xf32>
    %21 = tpu.matmul %19, %20, %cst_14 {dimension_numbers = #tpu.dot_dimension_numbers<[1], [0], [0], [1], [0, 0, 1, 1], [], []>} : vector<256x128xbf16>, vector<128x16xbf16>, vector<256x16xf32> -> vector<256x16xf32>
    %c0_15 = arith.constant 0 : index
    %c0_16 = arith.constant 0 : index
    %22 = vector.load %arg7[%c0_15, %c0_16] : memref<1x16xf32, #tpu.memory_space<vmem>>, vector<1x16xf32>
    %23 = vector.broadcast %22 : vector<1x16xf32> to vector<256x16xf32>
    %24 = arith.addf %21, %23 : vector<256x16xf32>
    %c0_17 = arith.constant 0 : index
    %c0_18 = arith.constant 0 : index
    %25 = vector.load %arg8[%c0_17, %c0_18] : memref<256x16xf32, #tpu.memory_space<vmem>>, vector<256x16xf32>
    tpu.vector_store %arg8[%c0_17, %c0_18], %24 {strides = array<i32>} : memref<256x16xf32, #tpu.memory_space<vmem>>, vector<256x16xf32>,
    return
  }
  func.func @transform_0(%arg0: i32) -> (i32, i32) {
    %c0_i32 = arith.constant 0 : i32
    %c0_i32_0 = arith.constant 0 : i32
    return %arg0, %c0_i32 : i32, i32
  }
  func.func @transform_1(%arg0: i32) -> (i32, i32) {
    %c0_i32 = arith.constant 0 : i32
    %c0_i32_0 = arith.constant 0 : i32
    %c0_i32_1 = arith.constant 0 : i32
    return %c0_i32, %c0_i32_0 : i32, i32
  }
  func.func @transform_2(%arg0: i32) -> (i32, i32) {
    %c0_i32 = arith.constant 0 : i32
    %c0_i32_0 = arith.constant 0 : i32
    %c0_i32_1 = arith.constant 0 : i32
    return %c0_i32, %c0_i32_0 : i32, i32
  }
  func.func @transform_3(%arg0: i32) -> (i32, i32) {
    %c0_i32 = arith.constant 0 : i32
    %c0_i32_0 = arith.constant 0 : i32
    %c0_i32_1 = arith.constant 0 : i32
    return %c0_i32, %c0_i32_0 : i32, i32
  }
  func.func @transform_4(%arg0: i32) -> (i32, i32) {
    %c0_i32 = arith.constant 0 : i32
    %c0_i32_0 = arith.constant 0 : i32
    %c0_i32_1 = arith.constant 0 : i32
    return %c0_i32, %c0_i32_0 : i32, i32
  }
  func.func @transform_5(%arg0: i32) -> (i32, i32) {
    %c0_i32 = arith.constant 0 : i32
    %c0_i32_0 = arith.constant 0 : i32
    %c0_i32_1 = arith.constant 0 : i32
    return %c0_i32, %c0_i32_0 : i32, i32
  }
  func.func @transform_6(%arg0: i32) -> (i32, i32) {
    %c0_i32 = arith.constant 0 : i32
    %c0_i32_0 = arith.constant 0 : i32
    %c0_i32_1 = arith.constant 0 : i32
    return %c0_i32, %c0_i32_0 : i32, i32
  }
  func.func @transform_7(%arg0: i32) -> (i32, i32) {
    %c0_i32 = arith.constant 0 : i32
    %c0_i32_0 = arith.constant 0 : i32
    return %arg0, %c0_i32 : i32, i32
  }
}

</mosaic_0001>

<bundles_post_ra>
// kernel: preprocess_and_forward.1
= control target key start
LH: loop header
LB: loop body
LE: loop exit
PB: predicated region body
PF: predicated region fallthrough
CT: control target
= control target key end

     0   :  { %s1098_s24 = smov 0   ;;  %s1416_s0 = inlined_call_operand.vmem [shape: f32[512,32], index: 0, kind: input, shape index: {}]   ;;  %s1417_s1 = inlined_call_operand.vmem [shape: f32[1,32], index: 1, kind: input, shape index: {}]   ;;  %s1418_s2 = inlined_call_operand.vmem [shape: f32[1,32], index: 2, kind: input, shape index: {}]   ;;  %s1419_s3 = inlined_call_operand.vmem [shape: bf16[32,128], index: 3, kind: input, shape index: {}]   ;;  %s1420_s4 = inlined_call_operand.vmem [shape: f32[1,128], index: 4, kind: input, shape index: {}]   ;;  %s1421_s5 = inlined_call_operand.vmem [shape: bf16[128,16], index: 5, kind: input, shape index: {}]   ;;  %s1422_s6 = inlined_call_operand.vmem [shape: f32[1,16], index: 6, kind: input, shape index: {}]   ;;  %s1423_s7 = inlined_call_operand.vmem [shape: f32[512,16], index: 7, kind: output, shape index: {}]  }
   0x1 LB: > { %s919_s25 = sadd.s32 4294967295, %s1056_s24   ;;  %p923_p0 = scmp.ge.s32.totalorder %s1056_s24, 1  ;;  %s1056_s24 = sphi %s1098_s24, %s17_s24  }
   0x2   : > { %p238_p1 = scmp.lt.s32.totalorder %s1056_s24, 3 }
   0x4   : > { %p239_p2 = pnand %p923_p0, %p238_p1 }
   0x5   : > { %s924_s28 = sshll.u32 (!%p239_p2), %s919_s25, 5 }
   0x6   : > { %242 = sbr.rel (%p239_p2) target bundleno = 546 (0x222), region = 48  ;;  %p271_p3 = scmp.lt.s32.totalorder (!%p239_p2), %s924_s28, 63 }
   0xb   : > { %v1019_v0 = vld [vmem:[%s1419_s3 + $0x8] sm:$0xff]  ;;  %v1018_v1 = vld [vmem:[%s1419_s3] sm:$0xff]  ;;  %s1425_s28 = smov (!%p271_p3, %s924_s28), 63  ;;  %vm487_vm0 = vcmask 261120   ;;  %v1027_v53 = vld [vmem:[%s1421_s5 + $0x38] sm:$0xff]  ;;  %vm830_vm1 = vcmask 130048  }
   0xc   : > { %542 = vmatpush.bf16.msra.mxu0 %v1019_v0  ;;  %1028 = vmatpush.bf16.msra.mxu3 %v1019_v0  ;;  %v1117_v2 = vld [vmem:[%s1417_s1] ss:$0 sm:$0xff]  ;;  %s925_s10 = sshll.u32 %s1425_s28, 3  ;;  %v1026_v61 = vld [vmem:[%s1421_s5 + $0x30] sm:$0xff]  ;;  %v1025_v0 = vld [vmem:[%s1421_s5 + $0x28] sm:$0xff] }
   0xd   : > { %s1125_s13 = scalar_lea.vmem %s1416_s0, %s925_s10  ;;  %v1130_v3 = vld [vmem:[%s1418_s2] ss:$0 sm:$0xff]  ;;  %741 = vmatpush.bf16.msra.mxu1 %v1027_v53  ;;  %1030 = vmatpush.bf16.msra.mxu2 %v1027_v53  ;;  %s1301_s18 = scalar_lea.vmem %s1423_s7, %s925_s10 }
   0xe   : > { %v283_v4 = vld [vmem:[%s1125_s13] sm:$0xff]  ;;  %v284_v5 = vld [vmem:[%s1125_s13 + $0x8] sm:$0xff]  ;;  %v285_v12 = vld [vmem:[%s1125_s13 + $0x10] sm:$0xff] }
   0xf   : > { %v319_v6 = vmul.f32 %v1117_v2, %v283_v4  ;;  %v320_v7 = vmul.f32 %v1117_v2, %v284_v5  ;;  %v286_v13 = vld [vmem:[%s1125_s13 + $0x18] sm:$0xff]  ;;  %v321_v15 = vmul.f32 %v1117_v2, %v285_v12  ;;  %v287_v22 = vld [vmem:[%s1125_s13 + $0x20] sm:$0xff]  ;;  %v288_v23 = vld [vmem:[%s1125_s13 + $0x28] sm:$0xff] }
  0x10   : > { %543 = vmatpush.bf16.msra.mxu0 %v1018_v1  ;;  %1029 = vmatpush.bf16.msra.mxu3 %v1018_v1  ;;  %v322_v16 = vmul.f32 %v1117_v2, %v286_v13  ;;  %v323_v24 = vmul.f32 %v1117_v2, %v287_v22  ;;  %v324_v25 = vmul.f32 %v1117_v2, %v288_v23  ;;  %v289_v31 = vld [vmem:[%s1125_s13 + $0x30] sm:$0xff]  ;;  %v290_v32 = vld [vmem:[%s1125_s13 + $0x38] sm:$0xff]  ;;  %v291_v40 = vld [vmem:[%s1125_s13 + $0x40] sm:$0xff] }
  0x11   : > { %v355_v8 = vsub.f32 %v319_v6, %v1130_v3  ;;  %v356_v9 = vsub.f32 %v320_v7, %v1130_v3  ;;  %v357_v17 = vsub.f32 %v321_v15, %v1130_v3  ;;  %v325_v33 = vmul.f32 %v1117_v2, %v289_v31  ;;  %v292_v41 = vld [vmem:[%s1125_s13 + $0x48] sm:$0xff]  ;;  %v293_v49 = vld [vmem:[%s1125_s13 + $0x50] sm:$0xff]  ;;  %v294_v50 = vld [vmem:[%s1125_s13 + $0x58] sm:$0xff]  ;;  %742 = vmatpush.bf16.msra.mxu1 %v1026_v61 }
  0x12   : > { %v358_v18 = vsub.f32 %v322_v16, %v1130_v3  ;;  %v359_v26 = vsub.f32 %v323_v24, %v1130_v3  ;;  %v360_v27 = vsub.f32 %v324_v25, %v1130_v3  ;;  %v326_v34 = vmul.f32 %v1117_v2, %v290_v32  ;;  %v295_v59 = vld [vmem:[%s1125_s13 + $0x60] sm:$0xff]  ;;  %v296_v60 = vld [vmem:[%s1125_s13 + $0x68] sm:$0xff]  ;;  %1031 = vmatpush.bf16.msra.mxu2 %v1026_v61  ;;  %v1023_v12 = vld [vmem:[%s1421_s5 + $0x18] sm:$0xff] }
  0x13   : > { %v928_v10 = vclamps-f32 %v355_v8, 3.0  ;;  %v929_v11 = vclamps-f32 %v356_v9, 3.0  ;;  %v930_v19 = vclamps-f32 %v357_v17, 3.0  ;;  %v361_v35 = vsub.f32 %v325_v33, %v1130_v3  ;;  %v1024_v5 = vld [vmem:[%s1421_s5 + $0x20] sm:$0xff]  ;;  %v301_v8 = vld [vmem:[%s1125_s13 + $0x90] sm:$0xff]  ;;  %v302_v9 = vld [vmem:[%s1125_s13 + $0x98] sm:$0xff] }
  0x14   : > { %v931_v20 = vclamps-f32 %v358_v18, 3.0  ;;  %v932_v28 = vclamps-f32 %v359_v26, 3.0  ;;  %v933_v29 = vclamps-f32 %v360_v27, 3.0  ;;  %v362_v36 = vsub.f32 %v326_v34, %v1130_v3  ;;  %v297_v16 = vld [vmem:[%s1125_s13 + $0x70] sm:$0xff]  ;;  %v298_v17 = vld [vmem:[%s1125_s13 + $0x78] sm:$0xff]  ;;  %v1021_v24 = vld [vmem:[%s1421_s5 + $0x8] sm:$0xff] }
  0x15   : > { %v451_v14 = vpack.c.bf16 %v929_v11, %v928_v10  ;;  %v934_v37 = vclamps-f32 %v361_v35, 3.0  ;;  %v327_v42 = vmul.f32 %v1117_v2, %v291_v40  ;;  %v328_v43 = vmul.f32 %v1117_v2, %v292_v41  ;;  %743 = vmatpush.bf16.msra.mxu1 %v1025_v0  ;;  %v1020_v27 = vld [vmem:[%s1421_s5] sm:$0xff]  ;;  %v304_v31 = vld [vmem:[%s1125_s13 + $0xa8] sm:$0xff] }
  0x16   : > { %v452_v21 = vpack.c.bf16 %v931_v20, %v930_v19  ;;  %v453_v30 = vpack.c.bf16 %v933_v29, %v932_v28  ;;  %v935_v38 = vclamps-f32 %v362_v36, 3.0  ;;  %v329_v51 = vmul.f32 %v1117_v2, %v293_v49  ;;  %1032 = vmatpush.bf16.msra.mxu2 %v1025_v0  ;;  %v1022_v20 = vld [vmem:[%s1421_s5 + $0x10] sm:$0xff]  ;;  %v306_v49 = vld [vmem:[%s1125_s13 + $0xb8] sm:$0xff] }
  0x17   : > { %968 = vmatmul.msk.bf16.vlgmr.msra.gmra.mxu0 %vm487_vm0, %v451_v14  ;;  %v363_v44 = vsub.f32 %v327_v42, %v1130_v3  ;;  %v364_v45 = vsub.f32 %v328_v43, %v1130_v3  ;;  %v330_v52 = vmul.f32 %v1117_v2, %v294_v50  ;;  %v331_v62 = vmul.f32 %v1117_v2, %v295_v59 }
  0x18   : > { %v454_v39 = vpack.c.bf16 %v935_v38, %v934_v37  ;;  %v365_v54 = vsub.f32 %v329_v51, %v1130_v3  ;;  %v332_v63 = vmul.f32 %v1117_v2, %v296_v60  ;;  %v337_v10 = vmul.f32 %v1117_v2, %v301_v8  ;;  %v299_v37 = vld [vmem:[%s1125_s13 + $0x80] sm:$0xff]  ;;  %v300_v38 = vld [vmem:[%s1125_s13 + $0x88] sm:$0xff] }
  0x19   : > { %v936_v46 = vclamps-f32 %v363_v44, 3.0  ;;  %v937_v47 = vclamps-f32 %v364_v45, 3.0  ;;  %v366_v55 = vsub.f32 %v330_v52, %v1130_v3  ;;  %v367_v1 = vsub.f32 %v331_v62, %v1130_v3  ;;  %744 = vmatpush.bf16.msra.mxu1 %v1024_v5 }
  0x1a   : > { %v938_v56 = vclamps-f32 %v365_v54, 3.0  ;;  %v368_v4 = vsub.f32 %v332_v63, %v1130_v3  ;;  %1033 = vmatpush.bf16.msra.mxu2 %v1024_v5  ;;  %v338_v11 = vmul.f32 %v1117_v2, %v302_v9  ;;  %v373_v14 = vsub.f32 %v337_v10, %v1130_v3 }
  0x1b   : > { %v455_v48 = vpack.c.bf16 %v937_v47, %v936_v46  ;;  %v939_v57 = vclamps-f32 %v366_v55, 3.0  ;;  %v940_v6 = vclamps-f32 %v367_v1, 3.0  ;;  %v334_v22 = vmul.f32 %v1117_v2, %v298_v17  ;;  %v307_v1 = vld [vmem:[%s1125_s13 + $0xc0] sm:$0xff] }
  0x1c   : > { %v941_v7 = vclamps-f32 %v368_v4, 3.0  ;;  %v374_v15 = vsub.f32 %v338_v11, %v1130_v3  ;;  %v946_v18 = vclamps-f32 %v373_v14, 3.0  ;;  %v340_v33 = vmul.f32 %v1117_v2, %v304_v31  ;;  %v308_v4 = vld [vmem:[%s1125_s13 + $0xc8] sm:$0xff] }
  0x1d   : > { %v456_v58 = vpack.c.bf16 %v939_v57, %v938_v56  ;;  %745 = vmatpush.bf16.msra.mxu1 %v1023_v12  ;;  %v370_v26 = vsub.f32 %v334_v22, %v1130_v3  ;;  %v335_v41 = vmul.f32 %v1117_v2, %v299_v37  ;;  %v336_v42 = vmul.f32 %v1117_v2, %v300_v38 }
  0x1e   : > { %v457_v13 = vpack.c.bf16 %v941_v7, %v940_v6  ;;  %1034 = vmatpush.bf16.msra.mxu2 %v1023_v12  ;;  %v947_v19 = vclamps-f32 %v374_v15, 3.0  ;;  %v376_v36 = vsub.f32 %v340_v33, %v1130_v3  ;;  %v342_v51 = vmul.f32 %v1117_v2, %v306_v49 }
  0x1f   : > { %v943_v29 = vclamps-f32 %v370_v26, 3.0  ;;  %v371_v44 = vsub.f32 %v335_v41, %v1130_v3  ;;  %v372_v45 = vsub.f32 %v336_v42, %v1130_v3  ;;  %v343_v6 = vmul.f32 %v1117_v2, %v307_v1 }
  0x20   : > { %v460_v23 = vpack.c.bf16 %v947_v19, %v946_v18  ;;  %v949_v40 = vclamps-f32 %v376_v36, 3.0  ;;  %v378_v54 = vsub.f32 %v342_v51, %v1130_v3  ;;  %v344_v7 = vmul.f32 %v1117_v2, %v308_v4  ;;  %v309_v19 = vld [vmem:[%s1125_s13 + $0xd0] sm:$0xff]  ;;  %v312_v36 = vld [vmem:[%s1125_s13 + $0xe8] sm:$0xff] }
  0x21   : > { %746 = vmatpush.bf16.msra.mxu1 %v1022_v20  ;;  %v944_v46 = vclamps-f32 %v371_v44, 3.0  ;;  %v945_v47 = vclamps-f32 %v372_v45, 3.0  ;;  %v379_v8 = vsub.f32 %v343_v6, %v1130_v3  ;;  %v345_v22 = vmul.f32 %v1117_v2, %v309_v19  ;;  %v313_v51 = vld [vmem:[%s1125_s13 + $0xf0] sm:$0xff] }
  0x22   : > { %1035 = vmatpush.bf16.msra.mxu2 %v1022_v20  ;;  %977 = vmatmul.msk.bf16.vlgmr.msra.gmra.mxu3 %vm487_vm0, %v460_v23  ;;  %v951_v57 = vclamps-f32 %v378_v54, 3.0  ;;  %v380_v9 = vsub.f32 %v344_v7, %v1130_v3  ;;  %v310_v20 = vld [vmem:[%s1125_s13 + $0xd8] sm:$0xff]  ;;  %v349_v54 = vmul.f32 %v1117_v2, %v313_v51 }
  0x23   : > { %v459_v52 = vpack.c.bf16 %v945_v47, %v944_v46  ;;  %v952_v11 = vclamps-f32 %v379_v8, 3.0  ;;  %v346_v23 = vmul.f32 %v1117_v2, %v310_v20 }
  0x24   : > { %v953_v12 = vclamps-f32 %v380_v9, 3.0 }
  0x25   : > { %747 = vmatpush.bf16.msra.mxu1 %v1021_v24 }
  0x26   : > { %1036 = vmatpush.bf16.msra.mxu2 %v1021_v24  ;;  %v381_v24 = vsub.f32 %v345_v22, %v1130_v3 }
  0x27   : > { %969 = vmatmul.msk.bf16.gmra.mxu0 %vm487_vm0, %v452_v21  ;;  %v333_v21 = vmul.f32 %v1117_v2, %v297_v16 }
  0x29   : > { %v369_v25 = vsub.f32 %v333_v21, %v1130_v3  ;;  %748 = vmatpush.bf16.msra.mxu1 %v1020_v27 }
  0x2a   : > { %1037 = vmatpush.bf16.msra.mxu2 %v1020_v27  ;;  %v954_v27 = vclamps-f32 %v381_v24, 3.0 }
  0x2b   : > { %v942_v28 = vclamps-f32 %v369_v25, 3.0  ;;  %v382_v25 = vsub.f32 %v346_v23, %v1130_v3 }
  0x2d   : > { %v458_v34 = vpack.c.bf16 %v943_v29, %v942_v28  ;;  %v955_v28 = vclamps-f32 %v382_v25, 3.0 }
  0x2f   : > { %v464_v29 = vpack.c.bf16 %v955_v28, %v954_v27 }
  0x37   : > { %970 = vmatmul.msk.bf16.gmra.mxu0 %vm487_vm0, %v453_v30  ;;  %v303_v30 = vld [vmem:[%s1125_s13 + $0xa0] sm:$0xff] }
  0x38   : > { %v339_v32 = vmul.f32 %v1117_v2, %v303_v30 }
  0x3a   : > { %v375_v35 = vsub.f32 %v339_v32, %v1130_v3 }
  0x47   : > { %971 = vmatmul.msk.bf16.gmra.mxu0 %vm487_vm0, %v454_v39  ;;  %v948_v39 = vclamps-f32 %v375_v35, 3.0  ;;  %v311_v35 = vld [vmem:[%s1125_s13 + $0xe0] sm:$0xff] }
  0x48   : > { %v347_v38 = vmul.f32 %v1117_v2, %v311_v35 }
  0x49   : > { %v461_v43 = vpack.c.bf16 %v949_v40, %v948_v39  ;;  %v348_v39 = vmul.f32 %v1117_v2, %v312_v36 }
  0x4a   : > { %v383_v40 = vsub.f32 %v347_v38, %v1130_v3 }
  0x4b   : > { %978 = vmatmul.msk.bf16.gmra.mxu3 %vm487_vm0, %v461_v43  ;;  %v384_v41 = vsub.f32 %v348_v39, %v1130_v3 }
  0x4c   : > { %v956_v43 = vclamps-f32 %v383_v40, 3.0 }
  0x4d   : > { %v957_v44 = vclamps-f32 %v384_v41, 3.0 }
  0x4f   : > { %v465_v45 = vpack.c.bf16 %v957_v44, %v956_v43 }
  0x57   : > { %972 = vmatmul.msk.bf16.gmra.mxu0 %vm487_vm0, %v455_v48  ;;  %v305_v48 = vld [vmem:[%s1125_s13 + $0xb0] sm:$0xff] }
  0x58   : > { %v341_v50 = vmul.f32 %v1117_v2, %v305_v48 }
  0x5a   : > { %v377_v53 = vsub.f32 %v341_v50, %v1130_v3 }
  0x5c   : > { %v950_v56 = vclamps-f32 %v377_v53, 3.0 }
  0x5e   : > { %v462_v59 = vpack.c.bf16 %v951_v57, %v950_v56  ;;  %v385_v56 = vsub.f32 %v349_v54, %v1130_v3 }
  0x60   : > { %979 = vmatmul.msk.bf16.gmra.mxu3 %vm487_vm0, %v462_v59 }
  0x67   : > { %973 = vmatmul.msk.bf16.gmra.mxu0 %vm487_vm0, %v456_v58  ;;  %v1241_v58 = vld [vmem:[%s1420_s4] ss:$0 sm:$0xff] }
  0x77   : > { %974 = vmatmul.msk.bf16.gmra.mxu0 %vm487_vm0, %v457_v13  ;;  %v463_v13 = vpack.c.bf16 %v953_v12, %v952_v11 }
  0x79   : > { %980 = vmatmul.msk.bf16.gmra.mxu3 %vm487_vm0, %v463_v13 }
  0x87   : > { %975 = vmatmul.msk.bf16.gmra.mxu0 %vm487_vm0, %v458_v34 }
  0x89   : > { %981 = vmatmul.msk.bf16.gmra.mxu3 %vm487_vm0, %v464_v29 }
  0x94   : > { %v545_v55 = vpop.f32.mrf.mxu0 }
  0x95   : > { %v546_v60 = vadd.f32 %v1241_v58, %v545_v55 }
  0x97   : > { %976 = vmatmul.msk.bf16.gmra.mxu0 %vm487_vm0, %v459_v52  ;;  %v625_v63 = vmax.f32 %v546_v60, 0.0  ;;  %v314_v52 = vld [vmem:[%s1125_s13 + $0xf8] sm:$0xff]  ;;  %v958_v60 = vclamps-f32 %v385_v56, 3.0 }
  0x98   : > { %v350_v55 = vmul.f32 %v1117_v2, %v314_v52 }
  0x99   : > { %982 = vmatmul.msk.bf16.gmra.mxu3 %vm487_vm0, %v465_v45 }
  0x9a   : > { %v386_v57 = vsub.f32 %v350_v55, %v1130_v3 }
  0x9c   : > { %v547_v61 = vpop.f32.mrf.mxu0 }
  0x9d   : > { %v548_v62 = vadd.f32 %v1241_v58, %v547_v61  ;;  %v959_v61 = vclamps-f32 %v386_v57, 3.0 }
  0x9f   : > { %v626_v0 = vmax.f32 %v548_v62, 0.0  ;;  %v466_v62 = vpack.c.bf16 %v959_v61, %v958_v60 }
  0xa1   : > { %v657_v5 = vpack.c.bf16 %v626_v0, %v625_v63 }
  0xa3   : > { %749 = vmatmul.bf16.vlgmr.msra.gmra.mxu1 %v657_v5 }
  0xa4   : > { %v550_v10 = vpop.f32.mrf.mxu0 }
  0xa5   : > { %v551_v14 = vadd.f32 %v1241_v58, %v550_v10  ;;  %v590_v20 = vpop.f32.mrf.mxu3 }
  0xa6   : > { %v591_v41 = vadd.f32 %v1241_v58, %v590_v20 }
  0xa7   : > { %v627_v17 = vmax.f32 %v551_v14, 0.0 }
  0xa8   : > { %v643_v45 = vmax.f32 %v591_v41, 0.0 }
  0xa9   : > { %983 = vmatmul.msk.bf16.gmra.mxu3 %vm487_vm0, %v466_v62 }
  0xac   : > { %v552_v15 = vpop.f32.mrf.mxu0 }
  0xad   : > { %v553_v16 = vadd.f32 %v1241_v58, %v552_v15  ;;  %v592_v24 = vpop.f32.mrf.mxu3 }
  0xaf   : > { %v628_v18 = vmax.f32 %v553_v16, 0.0 }
  0xb1   : > { %v658_v21 = vpack.c.bf16 %v628_v18, %v627_v17 }
  0xb3   : > { %754 = vmatmul.bf16.gmra.mxu1 %v658_v21 }
  0xb4   : > { %v555_v26 = vpop.f32.mrf.mxu0 }
  0xb5   : > { %v556_v30 = vadd.f32 %v1241_v58, %v555_v26 }
  0xb7   : > { %v629_v33 = vmax.f32 %v556_v30, 0.0 }
  0xbc   : > { %v557_v31 = vpop.f32.mrf.mxu0 }
  0xbd   : > { %v558_v32 = vadd.f32 %v1241_v58, %v557_v31 }
  0xbf   : > { %v630_v34 = vmax.f32 %v558_v32, 0.0 }
  0xc1   : > { %v659_v37 = vpack.c.bf16 %v630_v34, %v629_v33  ;;  %v1294_v33 = vld [vmem:[%s1422_s6] ss:$0 sm:$0xff] }
  0xc3   : > { %759 = vmatmul.bf16.gmra.mxu1 %v659_v37 }
  0xc4   : > { %v560_v42 = vpop.f32.mrf.mxu0 }
  0xc5   : > { %v561_v46 = vadd.f32 %v1241_v58, %v560_v42  ;;  %v593_v42 = vadd.f32 %v1241_v58, %v592_v24 }
  0xc7   : > { %v631_v49 = vmax.f32 %v561_v46, 0.0  ;;  %v644_v46 = vmax.f32 %v593_v42, 0.0 }
  0xcc   : > { %v562_v47 = vpop.f32.mrf.mxu0 }
  0xcd   : > { %v563_v48 = vadd.f32 %v1241_v58, %v562_v47 }
  0xce   : > { %v595_v29 = vpop.f32.mrf.mxu3 }
  0xcf   : > { %v632_v50 = vmax.f32 %v563_v48, 0.0  ;;  %v596_v52 = vadd.f32 %v1241_v58, %v595_v29 }
  0xd1   : > { %v660_v53 = vpack.c.bf16 %v632_v50, %v631_v49  ;;  %v666_v49 = vpack.c.bf16 %v644_v46, %v643_v45  ;;  %v645_v55 = vmax.f32 %v596_v52, 0.0 }
  0xd3   : > { %764 = vmatmul.bf16.gmra.mxu1 %v660_v53 }
  0xd4   : > { %v565_v59 = vpop.f32.mrf.mxu0 }
  0xd5   : > { %v566_v63 = vadd.f32 %v1241_v58, %v565_v59 }
  0xd6   : > { %v597_v39 = vpop.f32.mrf.mxu3 }
  0xd7   : > { %v633_v4 = vmax.f32 %v566_v63, 0.0  ;;  %v598_v53 = vadd.f32 %v1241_v58, %v597_v39 }
  0xd9   : > { %v646_v56 = vmax.f32 %v598_v53, 0.0 }
  0xdb   : > { %v667_v61 = vpack.c.bf16 %v646_v56, %v645_v55 }
  0xdc   : > { %v567_v0 = vpop.f32.mrf.mxu0 }
  0xdd   : > { %v568_v1 = vadd.f32 %v1241_v58, %v567_v0 }
  0xdf   : > { %v634_v5 = vmax.f32 %v568_v1, 0.0 }
  0xe1   : > { %v661_v6 = vpack.c.bf16 %v634_v5, %v633_v4 }
  0xe3   : > { %769 = vmatmul.bf16.gmra.mxu1 %v661_v6  ;;  %v600_v44 = vpop.f32.mrf.mxu3 }
  0xe4   : > { %v570_v2 = vpop.f32.mrf.mxu0  ;;  %v601_v63 = vadd.f32 %v1241_v58, %v600_v44 }
  0xe5   : > { %v571_v7 = vadd.f32 %v1241_v58, %v570_v2 }
  0xe6   : > { %v647_v5 = vmax.f32 %v601_v63, 0.0 }
  0xe7   : > { %v635_v9 = vmax.f32 %v571_v7, 0.0 }
  0xeb   : > { %v602_v50 = vpop.f32.mrf.mxu3 }
  0xec   : > { %v572_v8 = vpop.f32.mrf.mxu0  ;;  %v603_v0 = vadd.f32 %v1241_v58, %v602_v50 }
  0xed   : > { %v573_v3 = vadd.f32 %v1241_v58, %v572_v8 }
  0xee   : > { %v648_v6 = vmax.f32 %v603_v0, 0.0 }
  0xef   : > { %v636_v10 = vmax.f32 %v573_v3, 0.0 }
  0xf0   : > { %v668_v8 = vpack.c.bf16 %v648_v6, %v647_v5 }
  0xf1   : > { %v662_v11 = vpack.c.bf16 %v636_v10, %v635_v9 }
  0xf3   : > { %774 = vmatmul.bf16.gmra.mxu1 %v662_v11 }
  0xf4   : > { %v575_v12 = vpop.f32.mrf.mxu0 }
  0xf5   : > { %v576_v13 = vadd.f32 %v1241_v58, %v575_v12 }
  0xf7   : > { %v637_v16 = vmax.f32 %v576_v13, 0.0 }
  0xfc   : > { %v577_v14 = vpop.f32.mrf.mxu0  ;;  %v605_v59 = vpop.f32.mrf.mxu3 }
  0xfd   : > { %v578_v15 = vadd.f32 %v1241_v58, %v577_v14  ;;  %v606_v10 = vadd.f32 %v1241_v58, %v605_v59 }
  0xff   : > { %v638_v17 = vmax.f32 %v578_v15, 0.0  ;;  %v649_v13 = vmax.f32 %v606_v10, 0.0 }
 0x101   : > { %v663_v18 = vpack.c.bf16 %v638_v17, %v637_v16 }
 0x103   : > { %779 = vmatmul.bf16.gmra.mxu1 %v663_v18 }
 0x104   : > { %v580_v19 = vpop.f32.mrf.mxu0  ;;  %v607_v4 = vpop.f32.mrf.mxu3 }
 0x105   : > { %v581_v21 = vadd.f32 %v1241_v58, %v580_v19  ;;  %v608_v11 = vadd.f32 %v1241_v58, %v607_v4 }
 0x107   : > { %v639_v25 = vmax.f32 %v581_v21, 0.0  ;;  %v650_v14 = vmax.f32 %v608_v11, 0.0 }
 0x109   : > { %v669_v18 = vpack.c.bf16 %v650_v14, %v649_v13 }
 0x10c   : > { %v582_v22 = vpop.f32.mrf.mxu0  ;;  %v610_v3 = vpop.f32.mrf.mxu3 }
 0x10d   : > { %v583_v23 = vadd.f32 %v1241_v58, %v582_v22  ;;  %v611_v21 = vadd.f32 %v1241_v58, %v610_v3 }
 0x10f   : > { %v640_v26 = vmax.f32 %v583_v23, 0.0  ;;  %v651_v24 = vmax.f32 %v611_v21, 0.0 }
 0x111   : > { %v664_v27 = vpack.c.bf16 %v640_v26, %v639_v25 }
 0x113   : > { %784 = vmatmul.bf16.gmra.mxu1 %v664_v27 }
 0x114   : > { %v585_v28 = vpop.f32.mrf.mxu0  ;;  %v612_v15 = vpop.f32.mrf.mxu3 }
 0x115   : > { %v586_v30 = vadd.f32 %v1241_v58, %v585_v28  ;;  %v613_v22 = vadd.f32 %v1241_v58, %v612_v15 }
 0x117   : > { %v641_v34 = vmax.f32 %v586_v30, 0.0  ;;  %v652_v25 = vmax.f32 %v613_v22, 0.0 }
 0x119   : > { %v670_v28 = vpack.c.bf16 %v652_v25, %v651_v24 }
 0x11c   : > { %v587_v31 = vpop.f32.mrf.mxu0  ;;  %v615_v20 = vpop.f32.mrf.mxu3 }
 0x11d   : > { %v588_v32 = vadd.f32 %v1241_v58, %v587_v31  ;;  %v616_v31 = vadd.f32 %v1241_v58, %v615_v20 }
 0x11f   : > { %v642_v35 = vmax.f32 %v588_v32, 0.0 }
 0x120   : > { %v750_v36 = vpop.f32.mrf.mxu1 }
 0x121   : > { %v751_v37 = vadd.f32 %v1294_v33, %v750_v36  ;;  %v665_v38 = vpack.c.bf16 %v642_v35, %v641_v34  ;;  %v653_v36 = vmax.f32 %v616_v31, 0.0 }
 0x123   : > { %831 = vst.msk [vmem:[%s1301_s18] sm:$0xff] %vm830_vm1, %v751_v37  ;;  %789 = vmatmul.bf16.vlgmr.msra.gmra.mxu2 %v665_v38 }
 0x124   : > { %v617_v29 = vpop.f32.mrf.mxu3 }
 0x125   : > { %v618_v32 = vadd.f32 %v1241_v58, %v617_v29 }
 0x127   : > { %v654_v37 = vmax.f32 %v618_v32, 0.0 }
 0x128   : > { %v752_v40 = vpop.f32.mrf.mxu1 }
 0x129   : > { %v753_v43 = vadd.f32 %v1294_v33, %v752_v40  ;;  %v671_v40 = vpack.c.bf16 %v654_v37, %v653_v36 }
 0x12b   : > { %832 = vst.msk [vmem:[%s1301_s18 + $0x8] sm:$0xff] %vm830_vm1, %v753_v43 }
 0x12c   : > { %v620_v35 = vpop.f32.mrf.mxu3 }
 0x12d   : > { %v621_v43 = vadd.f32 %v1241_v58, %v620_v35 }
 0x12f   : > { %v655_v46 = vmax.f32 %v621_v43, 0.0 }
 0x130   : > { %v755_v47 = vpop.f32.mrf.mxu1 }
 0x131   : > { %v756_v48 = vadd.f32 %v1294_v33, %v755_v47 }
 0x133   : > { %833 = vst.msk [vmem:[%s1301_s18 + $0x10] sm:$0xff] %vm830_vm1, %v756_v48  ;;  %794 = vmatmul.bf16.gmra.mxu2 %v666_v49 }
 0x134   : > { %v622_v41 = vpop.f32.mrf.mxu3 }
 0x135   : > { %v623_v44 = vadd.f32 %v1241_v58, %v622_v41 }
 0x137   : > { %v656_v47 = vmax.f32 %v623_v44, 0.0 }
 0x138   : > { %v757_v51 = vpop.f32.mrf.mxu1 }
 0x139   : > { %v758_v54 = vadd.f32 %v1294_v33, %v757_v51  ;;  %v672_v50 = vpack.c.bf16 %v656_v47, %v655_v46 }
 0x13b   : > { %834 = vst.msk [vmem:[%s1301_s18 + $0x18] sm:$0xff] %vm830_vm1, %v758_v54 }
 0x140   : > { %v760_v57 = vpop.f32.mrf.mxu1 }
 0x141   : > { %v761_v60 = vadd.f32 %v1294_v33, %v760_v57 }
 0x143   : > { %835 = vst.msk [vmem:[%s1301_s18 + $0x20] sm:$0xff] %vm830_vm1, %v761_v60  ;;  %799 = vmatmul.bf16.gmra.mxu2 %v667_v61 }
 0x148   : > { %v762_v62 = vpop.f32.mrf.mxu1 }
 0x149   : > { %v763_v1 = vadd.f32 %v1294_v33, %v762_v62 }
 0x14b   : > { %836 = vst.msk [vmem:[%s1301_s18 + $0x28] sm:$0xff] %vm830_vm1, %v763_v1 }
 0x150   : > { %v765_v2 = vpop.f32.mrf.mxu1 }
 0x151   : > { %v766_v7 = vadd.f32 %v1294_v33, %v765_v2 }
 0x153   : > { %837 = vst.msk [vmem:[%s1301_s18 + $0x30] sm:$0xff] %vm830_vm1, %v766_v7  ;;  %804 = vmatmul.bf16.gmra.mxu2 %v668_v8 }
 0x158   : > { %v767_v9 = vpop.f32.mrf.mxu1 }
 0x159   : > { %v768_v12 = vadd.f32 %v1294_v33, %v767_v9 }
 0x15b   : > { %838 = vst.msk [vmem:[%s1301_s18 + $0x38] sm:$0xff] %vm830_vm1, %v768_v12 }
 0x160   : > { %v770_v16 = vpop.f32.mrf.mxu1 }
 0x161   : > { %v771_v17 = vadd.f32 %v1294_v33, %v770_v16 }
 0x163   : > { %839 = vst.msk [vmem:[%s1301_s18 + $0x40] sm:$0xff] %vm830_vm1, %v771_v17  ;;  %809 = vmatmul.bf16.gmra.mxu2 %v669_v18 }
 0x168   : > { %v772_v19 = vpop.f32.mrf.mxu1 }
 0x169   : > { %v773_v23 = vadd.f32 %v1294_v33, %v772_v19 }
 0x16b   : > { %840 = vst.msk [vmem:[%s1301_s18 + $0x48] sm:$0xff] %vm830_vm1, %v773_v23 }
 0x170   : > { %v775_v26 = vpop.f32.mrf.mxu1 }
 0x171   : > { %v776_v27 = vadd.f32 %v1294_v33, %v775_v26 }
 0x173   : > { %841 = vst.msk [vmem:[%s1301_s18 + $0x50] sm:$0xff] %vm830_vm1, %v776_v27  ;;  %814 = vmatmul.bf16.gmra.mxu2 %v670_v28 }
 0x178   : > { %v777_v30 = vpop.f32.mrf.mxu1 }
 0x179   : > { %v778_v34 = vadd.f32 %v1294_v33, %v777_v30 }
 0x17b   : > { %842 = vst.msk [vmem:[%s1301_s18 + $0x58] sm:$0xff] %vm830_vm1, %v778_v34 }
 0x180   : > { %v780_v38 = vpop.f32.mrf.mxu1 }
 0x181   : > { %v781_v39 = vadd.f32 %v1294_v33, %v780_v38 }
 0x183   : > { %843 = vst.msk [vmem:[%s1301_s18 + $0x60] sm:$0xff] %vm830_vm1, %v781_v39  ;;  %819 = vmatmul.bf16.gmra.mxu2 %v671_v40 }
 0x188   : > { %v782_v42 = vpop.f32.mrf.mxu1 }
 0x189   : > { %v783_v45 = vadd.f32 %v1294_v33, %v782_v42 }
 0x18b   : > { %844 = vst.msk [vmem:[%s1301_s18 + $0x68] sm:$0xff] %vm830_vm1, %v783_v45 }
 0x190   : > { %v785_v48 = vpop.f32.mrf.mxu1 }
 0x191   : > { %v786_v49 = vadd.f32 %v1294_v33, %v785_v48 }
 0x193   : > { %845 = vst.msk [vmem:[%s1301_s18 + $0x70] sm:$0xff] %vm830_vm1, %v786_v49  ;;  %824 = vmatmul.bf16.gmra.mxu2 %v672_v50 }
 0x198   : > { %v787_v51 = vpop.f32.mrf.mxu1 }
 0x199   : > { %v788_v52 = vadd.f32 %v1294_v33, %v787_v51 }
 0x19b   : > { %846 = vst.msk [vmem:[%s1301_s18 + $0x78] sm:$0xff] %vm830_vm1, %v788_v52 }
 0x1a6   : > { %v790_v58 = vpop.f32.mrf.mxu2 }
 0x1a7   : > { %v791_v53 = vadd.f32 %v1294_v33, %v790_v58 }
 0x1a9   : > { %847 = vst.msk [vmem:[%s1301_s18 + $0x80] sm:$0xff] %vm830_vm1, %v791_v53 }
 0x1ae   : > { %v792_v54 = vpop.f32.mrf.mxu2 }
 0x1af   : > { %v793_v55 = vadd.f32 %v1294_v33, %v792_v54 }
 0x1b1   : > { %848 = vst.msk [vmem:[%s1301_s18 + $0x88] sm:$0xff] %vm830_vm1, %v793_v55 }
 0x1b6   : > { %v795_v56 = vpop.f32.mrf.mxu2 }
 0x1b7   : > { %v796_v57 = vadd.f32 %v1294_v33, %v795_v56 }
 0x1b9   : > { %849 = vst.msk [vmem:[%s1301_s18 + $0x90] sm:$0xff] %vm830_vm1, %v796_v57 }
 0x1be   : > { %v797_v59 = vpop.f32.mrf.mxu2 }
 0x1bf   : > { %v798_v60 = vadd.f32 %v1294_v33, %v797_v59 }
 0x1c1   : > { %850 = vst.msk [vmem:[%s1301_s18 + $0x98] sm:$0xff] %vm830_vm1, %v798_v60 }
 0x1c6   : > { %v800_v61 = vpop.f32.mrf.mxu2 }
 0x1c7   : > { %v801_v62 = vadd.f32 %v1294_v33, %v800_v61 }
 0x1c9   : > { %851 = vst.msk [vmem:[%s1301_s18 + $0xa0] sm:$0xff] %vm830_vm1, %v801_v62 }
 0x1ce   : > { %v802_v63 = vpop.f32.mrf.mxu2 }
 0x1cf   : > { %v803_v0 = vadd.f32 %v1294_v33, %v802_v63 }
 0x1d1   : > { %852 = vst.msk [vmem:[%s1301_s18 + $0xa8] sm:$0xff] %vm830_vm1, %v803_v0 }
 0x1d6   : > { %v805_v1 = vpop.f32.mrf.mxu2 }
 0x1d7   : > { %v806_v4 = vadd.f32 %v1294_v33, %v805_v1 }
 0x1d9   : > { %853 = vst.msk [vmem:[%s1301_s18 + $0xb0] sm:$0xff] %vm830_vm1, %v806_v4 }
 0x1de   : > { %v807_v5 = vpop.f32.mrf.mxu2 }
 0x1df   : > { %v808_v6 = vadd.f32 %v1294_v33, %v807_v5 }
 0x1e1   : > { %854 = vst.msk [vmem:[%s1301_s18 + $0xb8] sm:$0xff] %vm830_vm1, %v808_v6 }
 0x1e6   : > { %v810_v2 = vpop.f32.mrf.mxu2 }
 0x1e7   : > { %v811_v7 = vadd.f32 %v1294_v33, %v810_v2 }
 0x1e9   : > { %855 = vst.msk [vmem:[%s1301_s18 + $0xc0] sm:$0xff] %vm830_vm1, %v811_v7 }
 0x1ee   : > { %v812_v8 = vpop.f32.mrf.mxu2 }
 0x1ef   : > { %v813_v3 = vadd.f32 %v1294_v33, %v812_v8 }
 0x1f1   : > { %856 = vst.msk [vmem:[%s1301_s18 + $0xc8] sm:$0xff] %vm830_vm1, %v813_v3 }
 0x1f6   : > { %v815_v9 = vpop.f32.mrf.mxu2 }
 0x1f7   : > { %v816_v10 = vadd.f32 %v1294_v33, %v815_v9 }
 0x1f9   : > { %857 = vst.msk [vmem:[%s1301_s18 + $0xd0] sm:$0xff] %vm830_vm1, %v816_v10 }
 0x1fe   : > { %v817_v11 = vpop.f32.mrf.mxu2 }
 0x1ff   : > { %v818_v12 = vadd.f32 %v1294_v33, %v817_v11 }
 0x201   : > { %858 = vst.msk [vmem:[%s1301_s18 + $0xd8] sm:$0xff] %vm830_vm1, %v818_v12 }
 0x206   : > { %v820_v13 = vpop.f32.mrf.mxu2 }
 0x207   : > { %v821_v14 = vadd.f32 %v1294_v33, %v820_v13 }
 0x209   : > { %859 = vst.msk [vmem:[%s1301_s18 + $0xe0] sm:$0xff] %vm830_vm1, %v821_v14 }
 0x20e   : > { %v822_v15 = vpop.f32.mrf.mxu2 }
 0x20f   : > { %v823_v16 = vadd.f32 %v1294_v33, %v822_v15 }
 0x211   : > { %860 = vst.msk [vmem:[%s1301_s18 + $0xe8] sm:$0xff] %vm830_vm1, %v823_v16 }
 0x216   : > { %v825_v17 = vpop.f32.mrf.mxu2 }
 0x217   : > { %v826_v18 = vadd.f32 %v1294_v33, %v825_v17 }
 0x219   : > { %861 = vst.msk [vmem:[%s1301_s18 + $0xf0] sm:$0xff] %vm830_vm1, %v826_v18 }
 0x21e   : > { %v827_v19 = vpop.f32.mrf.mxu2 }
 0x21f   : > { %v828_v20 = vadd.f32 %v1294_v33, %v827_v19 }
 0x221   : > { %862 = vst.msk [vmem:[%s1301_s18 + $0xf8] sm:$0xff] %vm830_vm1, %v828_v20 }
 0x222 PF: > { %s17_s24 = sadd.s32 1, %s1056_s24  }
 0x223   : > { %p14_p4 = scmp.ge.s32.totalorder %s17_s24, 4  }
 0x225   :  { %16 = sbr.rel (!%p14_p4) target bundleno = 1 (0x1), region = 78 }

</bundles_post_ra>
